<compile_context>
chip_gen: v6e
topology: v6e:2x2x1
jax: 0.10.0
libtpu: 0.0.40
codegen_flags: <defaults>
</compile_context>

<pallas_src>
import jax
import jax.numpy as jnp
from jax.experimental import pallas as pl
from jax.experimental.pallas import tpu as pltpu


def _attentive_pooling_kernel(mem_ref, wt_ref, b_ref, u_ref, mask_ref, out_ref):
    # mem_ref : (TB, Sp, Hp)   wt_ref : (Hp, Hp)   b_ref/u_ref : (1, Hp)
    # mask_ref: (TB, Sp) int32 out_ref: (TB, Hp)
    tb, s, h = mem_ref.shape
    mem = mem_ref[...]                                        # (TB, S, H)

    # --- h = tanh(memory @ W.T + b): one big MXU matmul, f32 accumulation ---
    hid = jnp.dot(mem.reshape(tb * s, h), wt_ref[...],
                  preferred_element_type=jnp.float32)
    hid = jnp.tanh(hid + b_ref[...])                          # (TB*S, H) f32
    hid = hid.reshape(tb, s, h)

    # --- score = <h, u>: VPU multiply + lane reduce, lane-dense (TB, S) ---
    score = jnp.sum(hid * u_ref[...], axis=-1)                # (TB, S)
    score = jnp.where(mask_ref[...] == 0, jnp.float32(-1e9), score)

    # --- numerically stable softmax over S (lane axis) ---
    score = score - jnp.max(score, axis=-1, keepdims=True)
    e = jnp.exp(score)
    denom = jnp.sum(e, axis=-1, keepdims=True)
    alpha = e * pl.reciprocal(denom, approx=True)             # (TB, S)

    # --- out = sum_S alpha * memory: VPU multiply + sublane reduce ---
    pooled = jnp.sum(alpha[:, :, None] * mem.astype(jnp.float32), axis=1)
    out_ref[...] = pooled.astype(out_ref.dtype)               # (TB, H)


def _round_up(x, m):
    return ((x + m - 1) // m) * m


def attentive_pooling_pallas(memory, w_weight, w_bias, u_weight, mask=None,
                             *, tb=8, matmul_dtype=None):
    """memory: (B, S, H); w_weight: (H, H) nn.Linear weight; w_bias: (H,);
    u_weight: (1, H) nn.Linear weight (no bias); mask: (B, S) int or None."""
    B, S, H = memory.shape
    out_dtype = memory.dtype

    Hp = _round_up(H, 128)           # lane-dense hidden dim
    Sp = _round_up(S, 8)             # sublane-aligned sequence dim
    tb = max(1, min(tb, B))          # batch rows per grid step
    Bp = _round_up(B, tb)

    mm_dtype = memory.dtype if matmul_dtype is None else matmul_dtype

    # Zero-padded, pre-transposed operands (layout plumbing in the wrapper).
    mem_p = jnp.zeros((Bp, Sp, Hp), mm_dtype).at[:B, :S, :H].set(
        memory.astype(mm_dtype))
    wt_p = jnp.zeros((Hp, Hp), mm_dtype).at[:H, :H].set(
        w_weight.T.astype(mm_dtype))
    b_p = jnp.zeros((1, Hp), jnp.float32).at[0, :H].set(
        w_bias.astype(jnp.float32))
    u_p = jnp.zeros((1, Hp), jnp.float32).at[0, :H].set(
        u_weight.reshape(-1).astype(jnp.float32))

    if mask is None:
        mask = jnp.ones((B, S), dtype=jnp.int32)
    mask_p = jnp.zeros((Bp, Sp), jnp.int32).at[:B, :S].set(
        mask.astype(jnp.int32))

    itemsize = jnp.dtype(mm_dtype).itemsize
    cost = pl.CostEstimate(
        flops=int(2 * Bp * Sp * Hp * Hp + 4 * Bp * Sp * Hp),
        transcendentals=int(Bp * Sp * Hp + Bp * Sp),
        bytes_accessed=int(Bp * Sp * Hp * itemsize + Hp * Hp * itemsize
                           + Bp * Hp * jnp.dtype(out_dtype).itemsize
                           + Bp * Sp * 4),
    )

    out_p = pl.pallas_call(
        _attentive_pooling_kernel,
        out_shape=jax.ShapeDtypeStruct((Bp, Hp), out_dtype),
        grid_spec=pltpu.PrefetchScalarGridSpec(
            num_scalar_prefetch=0,
            grid=(Bp // tb,),
            in_specs=[
                pl.BlockSpec((tb, Sp, Hp), lambda i: (i, 0, 0)),  # memory tile
                pl.BlockSpec((Hp, Hp), lambda i: (0, 0)),          # W.T (shared)
                pl.BlockSpec((1, Hp), lambda i: (0, 0)),           # bias row
                pl.BlockSpec((1, Hp), lambda i: (0, 0)),           # u row
                pl.BlockSpec((tb, Sp), lambda i: (i, 0)),          # mask tile
            ],
            out_specs=pl.BlockSpec((tb, Hp), lambda i: (i, 0)),
        ),
        compiler_params=pltpu.CompilerParams(
            dimension_semantics=("parallel",),
            vmem_limit_bytes=48 * 1024 * 1024,
        ),
        cost_estimate=cost,
    )(mem_p, wt_p, b_p, u_p, mask_p)

    return out_p[:B, :H]


def attentive_pooling_ref(memory, w_weight, w_bias, u_weight, mask=None):
    # Pure-JAX reference matching the PyTorch forward.
    h = jnp.tanh(memory @ w_weight.T + w_bias)         # (B, S, H)
    score = jnp.squeeze(h @ u_weight.T, -1)            # (B, S)
    if mask is not None:
        score = jnp.where(mask == 0, -1e9, score)
    alpha = jax.nn.softmax(score, axis=-1)              # (B, S)
    return jnp.sum(alpha[..., None] * memory, axis=1)   # (B, H)


if __name__ == "__main__":
    B, S, H = 2, 8, 32
    key = jax.random.PRNGKey(0)
    k_mem, k_w, k_b, k_u = jax.random.split(key, 4)

    memory = jax.random.normal(k_mem, (B, S, H), dtype=jnp.float32)

    # Deterministic parameter init (shapes from nn.Linear in __init__):
    #   self.w: Linear(H, H)         -> weight (H, H), bias (H,)
    #   self.u: Linear(H, 1, False)  -> weight (1, H)
    bound_w = 1.0 / jnp.sqrt(H)
    w_weight = jax.random.uniform(k_w, (H, H), minval=-bound_w, maxval=bound_w,
                                  dtype=jnp.float32)
    w_bias = jax.random.uniform(k_b, (H,), minval=-bound_w, maxval=bound_w,
                                dtype=jnp.float32)
    u_weight = jax.random.uniform(k_u, (1, H), minval=-bound_w, maxval=bound_w,
                                  dtype=jnp.float32)

    # Mask: last two positions of batch 1 are padding (mask == 0 there).
    mask = jnp.ones((B, S), dtype=jnp.int32)
    mask = mask.at[1, S - 2:].set(0)

    # f32 path (tolerance relaxed slightly vs exact division because the
    # softmax denominator uses the approx EUP reciprocal).
    out = jax.block_until_ready(
        attentive_pooling_pallas(memory, w_weight, w_bias, u_weight, mask))
    ref = attentive_pooling_ref(memory, w_weight, w_bias, u_weight, mask)
    assert out.shape == (B, H)
    assert jnp.allclose(out, ref, rtol=2e-3, atol=2e-4), (
        f"max abs err {jnp.max(jnp.abs(out - ref))}")

    # mask=None path (module allows it).
    out_nm = jax.block_until_ready(
        attentive_pooling_pallas(memory, w_weight, w_bias, u_weight, None))
    ref_nm = attentive_pooling_ref(memory, w_weight, w_bias, u_weight, None)
    assert jnp.allclose(out_nm, ref_nm, rtol=2e-3, atol=2e-4), (
        f"max abs err {jnp.max(jnp.abs(out_nm - ref_nm))}")

    # bf16 MXU path with f32 accumulation (loose check vs the f32 reference).
    out_bf16 = jax.block_until_ready(
        attentive_pooling_pallas(memory, w_weight, w_bias, u_weight, mask,
                                 matmul_dtype=jnp.bfloat16))
    assert float(jnp.max(jnp.abs(out_bf16 - ref))) < 1e-1

    print("KERNEL_OK")
</pallas_src>

<mosaic_0001>
module attributes {stable_mosaic.version = 11 : i64} {
  func.func @_attentive_pooling_kernel(%arg0: i32, %arg1: memref<2x8x128xf32, #tpu.memory_space<vmem>>, %arg2: memref<128x128xf32, #tpu.memory_space<vmem>>, %arg3: memref<1x128xf32, #tpu.memory_space<vmem>>, %arg4: memref<1x128xf32, #tpu.memory_space<vmem>>, %arg5: memref<2x8xi32, #tpu.memory_space<vmem>>, %arg6: memref<2x128xf32, #tpu.memory_space<vmem>>) attributes {dimension_semantics = [#tpu.dimension_semantics<parallel>], iteration_bounds = array<i64: 1>, scalar_prefetch = 0 : i64, scratch_operands = 0 : i64, tpu.core_type = #tpu.core_type<tc>, window_params = [{transform_indices = @transform_0, window_bounds = array<i64: 2, 8, 128>}, {pipeline_mode = #tpu.pipeline_mode<synchronous>, transform_indices = @transform_1, window_bounds = array<i64: 128, 128>}, {pipeline_mode = #tpu.pipeline_mode<synchronous>, transform_indices = @transform_2, window_bounds = array<i64: 1, 128>}, {pipeline_mode = #tpu.pipeline_mode<synchronous>, transform_indices = @transform_3, window_bounds = array<i64: 1, 128>}, {transform_indices = @transform_4, window_bounds = array<i64: 2, 8>}, {transform_indices = @transform_5, window_bounds = array<i64: 2, 128>}]} {
    %c0 = arith.constant 0 : index
    %c0_0 = arith.constant 0 : index
    %c0_1 = arith.constant 0 : index
    %0 = vector.load %arg1[%c0, %c0_0, %c0_1] : memref<2x8x128xf32, #tpu.memory_space<vmem>>, vector<2x8x128xf32>
    %1 = vector.shape_cast %0 : vector<2x8x128xf32> to vector<16x128xf32>
    %c0_2 = arith.constant 0 : index
    %c0_3 = arith.constant 0 : index
    %2 = vector.load %arg2[%c0_2, %c0_3] : memref<128x128xf32, #tpu.memory_space<vmem>>, vector<128x128xf32>
    %cst = arith.constant dense<0.000000e+00> : vector<16x128xf32>
    %3 = tpu.matmul %1, %2, %cst {dimension_numbers = #tpu.dot_dimension_numbers<[1], [0], [0], [1], [0, 0, 1, 1], [], []>} : vector<16x128xf32>, vector<128x128xf32>, vector<16x128xf32> -> vector<16x128xf32>
    %c0_4 = arith.constant 0 : index
    %c0_5 = arith.constant 0 : index
    %4 = vector.load %arg3[%c0_4, %c0_5] : memref<1x128xf32, #tpu.memory_space<vmem>>, vector<1x128xf32>
    %5 = vector.broadcast %4 : vector<1x128xf32> to vector<16x128xf32>
    %6 = arith.addf %3, %5 : vector<16x128xf32>
    %7 = math.tanh %6 : vector<16x128xf32>
    %8 = vector.shape_cast %7 : vector<16x128xf32> to vector<2x8x128xf32>
    %c0_6 = arith.constant 0 : index
    %c0_7 = arith.constant 0 : index
    %9 = vector.load %arg4[%c0_6, %c0_7] : memref<1x128xf32, #tpu.memory_space<vmem>>, vector<1x128xf32>
    %10 = vector.shape_cast %9 : vector<1x128xf32> to vector<1x1x128xf32>
    %11 = vector.broadcast %10 : vector<1x1x128xf32> to vector<2x8x128xf32>
    %12 = arith.mulf %8, %11 : vector<2x8x128xf32>
    %cst_8 = arith.constant dense<0.000000e+00> : vector<2x8xf32>
    %13 = vector.multi_reduction <add>, %12, %cst_8 [2] : vector<2x8x128xf32> to vector<2x8xf32>
    %c0_9 = arith.constant 0 : index
    %c0_10 = arith.constant 0 : index
    %14 = vector.load %arg5[%c0_9, %c0_10] : memref<2x8xi32, #tpu.memory_space<vmem>>, vector<2x8xi32>
    %c0_i32 = arith.constant 0 : i32
    %15 = vector.broadcast %c0_i32 : i32 to vector<2x8xi32>
    %16 = arith.cmpi eq, %14, %15 : vector<2x8xi32>
    %cst_11 = arith.constant -1.000000e+09 : f32
    %17 = vector.broadcast %cst_11 : f32 to vector<2x8xf32>
    %18 = arith.select %16, %17, %13 : vector<2x8xi1>, vector<2x8xf32>
    %cst_12 = arith.constant dense<0xFF800000> : vector<2xf32>
    %19 = vector.multi_reduction <maximumf>, %18, %cst_12 [1] : vector<2x8xf32> to vector<2xf32>
    %20 = vector.shape_cast %19 : vector<2xf32> to vector<2x1xf32>
    %21 = vector.broadcast %20 : vector<2x1xf32> to vector<2x8xf32>
    %22 = arith.subf %18, %21 : vector<2x8xf32>
    %23 = math.exp %22 : vector<2x8xf32>
    %cst_13 = arith.constant dense<0.000000e+00> : vector<2xf32>
    %24 = vector.multi_reduction <add>, %23, %cst_13 [1] : vector<2x8xf32> to vector<2xf32>
    %25 = vector.shape_cast %24 : vector<2xf32> to vector<2x1xf32>
    %26 = tpu.reciprocal %25 {approx = true} : vector<2x1xf32> -> vector<2x1xf32>
    %27 = vector.broadcast %26 : vector<2x1xf32> to vector<2x8xf32>
    %28 = arith.mulf %23, %27 : vector<2x8xf32>
    %29 = vector.shape_cast %28 : vector<2x8xf32> to vector<2x8x1xf32>
    %30 = vector.broadcast %29 : vector<2x8x1xf32> to vector<2x8x128xf32>
    %31 = arith.mulf %30, %0 : vector<2x8x128xf32>
    %cst_14 = arith.constant dense<0.000000e+00> : vector<2x128xf32>
    %32 = vector.multi_reduction <add>, %31, %cst_14 [1] : vector<2x8x128xf32> to vector<2x128xf32>
    %c0_15 = arith.constant 0 : index
    %c0_16 = arith.constant 0 : index
    %33 = vector.load %arg6[%c0_15, %c0_16] : memref<2x128xf32, #tpu.memory_space<vmem>>, vector<2x128xf32>
    tpu.vector_store %arg6[%c0_15, %c0_16], %32 {strides = array<i32>} : memref<2x128xf32, #tpu.memory_space<vmem>>, vector<2x128xf32>,
    return
  }
  func.func @transform_0(%arg0: i32) -> (i32, i32, i32) {
    %c0_i32 = arith.constant 0 : i32
    %c0_i32_0 = arith.constant 0 : i32
    %c0_i32_1 = arith.constant 0 : i32
    return %arg0, %c0_i32, %c0_i32_0 : i32, i32, i32
  }
  func.func @transform_1(%arg0: i32) -> (i32, i32) {
    %c0_i32 = arith.constant 0 : i32
    %c0_i32_0 = arith.constant 0 : i32
    %c0_i32_1 = arith.constant 0 : i32
    return %c0_i32, %c0_i32_0 : i32, i32
  }
  func.func @transform_2(%arg0: i32) -> (i32, i32) {
    %c0_i32 = arith.constant 0 : i32
    %c0_i32_0 = arith.constant 0 : i32
    %c0_i32_1 = arith.constant 0 : i32
    return %c0_i32, %c0_i32_0 : i32, i32
  }
  func.func @transform_3(%arg0: i32) -> (i32, i32) {
    %c0_i32 = arith.constant 0 : i32
    %c0_i32_0 = arith.constant 0 : i32
    %c0_i32_1 = arith.constant 0 : i32
    return %c0_i32, %c0_i32_0 : i32, i32
  }
  func.func @transform_4(%arg0: i32) -> (i32, i32) {
    %c0_i32 = arith.constant 0 : i32
    %c0_i32_0 = arith.constant 0 : i32
    return %arg0, %c0_i32 : i32, i32
  }
  func.func @transform_5(%arg0: i32) -> (i32, i32) {
    %c0_i32 = arith.constant 0 : i32
    %c0_i32_0 = arith.constant 0 : i32
    return %arg0, %c0_i32 : i32, i32
  }
}

</mosaic_0001>

<bundles_post_ra>
// kernel: tpu_custom_call.1
= control target key start
LH: loop header
LB: loop body
LE: loop exit
PB: predicated region body
PF: predicated region fallthrough
CT: control target
= control target key end

     0   :  { %10 = vsyncpa [#allocation3], 0  ;;  %s436_s0 = inlined_call_operand.hbm [shape: f32[2,8,128], index: 0, kind: input, shape index: {}]   ;;  %s437_s1 = inlined_call_operand.hbm [shape: f32[128,128], index: 1, kind: input, shape index: {}]   ;;  %s438_s2 = inlined_call_operand.vmem [shape: f32[1,128], index: 2, kind: input, shape index: {}]   ;;  %s439_s3 = inlined_call_operand.vmem [shape: f32[1,128], index: 3, kind: input, shape index: {}]   ;;  %s440_s4 = inlined_call_operand.vmem [shape: s32[2,8], index: 4, kind: input, shape index: {}]   ;;  %s441_s5 = inlined_call_operand.hbm [shape: f32[2,128], index: 5, kind: output, shape index: {}]  }
   0x1   :  { %11 = vsyncpa [#allocation6], 0 }
   0x2   :  { %12 = vsyncpa [#allocation4], 0  ;;  %s377_s18 = smov [#allocation2]  }
   0x3   :  { %s18_s19 = sshll.u32 %s377_s18, 4  ;;  %s19_s19 = int_to_ptr.vmem [resolvable:$true] %s18_s19 }
   0x4   :  { %s319_s20 = scalar_lea.vmem %s19_s19, 256  ;;  %p324_p1 = scmp.lt.s32.totalorder %s19_s19, %s19_s19 }
   0x5   :  { %p320_p0 = scmp.ne.s32.totalorder %s19_s19, %s319_s20  ;;  %p325_p2 = scmp.lt.s32.totalorder %s319_s20, %s319_s20 }
   0x7   :  { %p326_p3 = por %p325_p2, %p324_p1 }
   0x9   :  { %p327_p4 = pnand %p326_p3, %p320_p0 }
   0xb   :  { %330 = shalt.err (!%p327_p4)
}
   0xc   :  { %s378_s21 = smov 128   ;;  %s379_s22 = smov 8  }
   0xd   :  { %24 = dma.hbm_to_vmem [thread:$0]  %s436_s0, 256, %s19_s19, [#allocation3], %s378_s21, %s378_s21, %s379_s22  }
   0xe   :  { %s380_s25 = smov [#allocation5]  }
   0xf   :  { %s30_s26 = sshll.u32 %s380_s25, 4  ;;  %s31_s26 = int_to_ptr.vmem [resolvable:$true] %s30_s26 }
  0x10   :  { %s339_s27 = scalar_lea.vmem %s31_s26, 2048  ;;  %p344_p6 = scmp.lt.s32.totalorder %s31_s26, %s31_s26 }
  0x11   :  { %p340_p5 = scmp.ne.s32.totalorder %s31_s26, %s339_s27  ;;  %p345_p7 = scmp.lt.s32.totalorder %s339_s27, %s339_s27 }
  0x13   :  { %p346_p8 = por %p345_p7, %p344_p6 }
  0x15   :  { %p347_p9 = pnand %p346_p8, %p340_p5 }
  0x17   :  { %350 = shalt.err (!%p347_p9)
}
  0x18   :  { %36 = dma.hbm_to_vmem [thread:$0]  %s437_s1, 2048, %s31_s26, [#allocation6], %s378_s21, %s378_s21, %s379_s22  }
  0x19   :  { %371 = dma.done.wait [#allocation3], 256  }
  0x1a   :  { %372 = vsyncadd [#allocation3], 4294967040 }
  0x1b   :  { %373 = dma.done.wait [#allocation6], 2048  }
  0x1c   :  { %374 = vsyncadd [#allocation6], 4294965248  ;;  %v66_v0 = vld [vmem:[#allocation5 + $0x78] sm:$0xff]  ;;  %v65_v1 = vld [vmem:[#allocation5 + $0x70] sm:$0xff]  ;;  %v168_v28 = vlaneseq  ;;  %vm178_vm0 = vcmask 1041409   ;;  %vm182_vm2 = vcmask 58368  }
  0x1d   :  { %263 = vmatprep.subr.mxu0 %v66_v0  ;;  %v64_v2 = vld [vmem:[#allocation5 + $0x68] sm:$0xff]  ;;  %v63_v3 = vld [vmem:[#allocation5 + $0x60] sm:$0xff]  ;;  %v418_v4 = vld [vmem:[#allocation2] sm:$0xff] }
  0x1e   :  { %264 = vmatpush3.msra.mxu0 %v66_v0  ;;  %v62_v5 = vld [vmem:[#allocation5 + $0x58] sm:$0xff]  ;;  %295 = vmatprep.mubr.f32.mxu0 %v418_v4  ;;  %v61_v6 = vld [vmem:[#allocation5 + $0x50] sm:$0xff]  ;;  %v60_v7 = vld [vmem:[#allocation5 + $0x48] sm:$0xff]  ;;  %v169_v29 = vand.u32 127, %v168_v28  ;;  %v171_v30 = vshrl.u32 %v168_v28, 7 }
  0x1f   :  { %265 = vmatprep.subr.mxu0 %v65_v1  ;;  %v59_v8 = vld [vmem:[#allocation5 + $0x40] sm:$0xff]  ;;  %v58_v9 = vld [vmem:[#allocation5 + $0x38] sm:$0xff]  ;;  %v57_v10 = vld [vmem:[#allocation5 + $0x30] sm:$0xff] }
  0x20   :  { %266 = vmatpush3.msra.mxu0 %v65_v1  ;;  %v56_v11 = vld [vmem:[#allocation5 + $0x28] sm:$0xff]  ;;  %v55_v12 = vld [vmem:[#allocation5 + $0x20] sm:$0xff]  ;;  %v54_v13 = vld [vmem:[#allocation5 + $0x18] sm:$0xff]  ;;  %v172_v32 = vsub.s32 %v169_v29, %v171_v30  ;;  %v203_v46 = vsub.s32 1, %v171_v30  ;;  %v196_v47 = vsub.s32 0, %v171_v30 }
  0x21   :  { %267 = vmatprep.subr.mxu0 %v64_v2  ;;  %v53_v14 = vld [vmem:[#allocation5 + $0x10] sm:$0xff]  ;;  %v52_v15 = vld [vmem:[#allocation5 + $0x8] sm:$0xff]  ;;  %v51_v16 = vld [vmem:[#allocation5] sm:$0xff] }
  0x22   :  { %268 = vmatpush3.msra.mxu0 %v64_v2  ;;  %v50_v17 = vld [vmem:[#allocation2 + $0x8] sm:$0xff]  ;;  %v243_v19 = vld [vmem:[%s438_s2] ss:$0 sm:$0xff] }
  0x23   :  { %269 = vmatprep.subr.mxu0 %v63_v3  ;;  %v244_v24 = vld [vmem:[%s439_s3] ss:$0 sm:$0xff]  ;;  %s381_s3 = smov [#allocation7]  }
  0x24   :  { %270 = vmatpush3.msra.mxu0 %v63_v3  ;;  %v164_v33 = vld [vmem:[%s440_s4] sm:$0x3]  ;;  %s233_s4 = sshll.u32 %s381_s3, 4  ;;  %s234_s4 = int_to_ptr.vmem [resolvable:$true] %s233_s4 }
  0x25   :  { %271 = vmatprep.subr.mxu0 %v62_v5  ;;  %vm165_vm1 = vcmp.eq.s32.totalorder %v164_v33, 0  ;;  %s351_s8 = scalar_lea.vmem %s234_s4, 32  ;;  %p356_p11 = scmp.lt.s32.totalorder %s234_s4, %s234_s4 }
  0x26   :  { %272 = vmatpush3.msra.mxu0 %v62_v5  ;;  %p352_p10 = scmp.ne.s32.totalorder %s234_s4, %s351_s8  ;;  %p357_p12 = scmp.lt.s32.totalorder %s351_s8, %s351_s8 }
  0x27   :  { %273 = vmatprep.subr.mxu0 %v61_v6 }
  0x28   :  { %274 = vmatpush3.msra.mxu0 %v61_v6  ;;  %p358_p13 = por %p357_p12, %p356_p11 }
  0x29   :  { %275 = vmatprep.subr.mxu0 %v60_v7 }
  0x2a   :  { %276 = vmatpush3.msra.mxu0 %v60_v7  ;;  %p359_p0 = pnand %p358_p13, %p352_p10 }
  0x2b   :  { %277 = vmatprep.subr.mxu0 %v59_v8 }
  0x2c   :  { %278 = vmatpush3.msra.mxu0 %v59_v8 }
  0x2d   :  { %279 = vmatprep.subr.mxu0 %v58_v9 }
  0x2e   :  { %280 = vmatpush3.msra.mxu0 %v58_v9 }
  0x2f   :  { %281 = vmatprep.subr.mxu0 %v57_v10 }
  0x30   :  { %282 = vmatpush3.msra.mxu0 %v57_v10 }
  0x31   :  { %283 = vmatprep.subr.mxu0 %v56_v11 }
  0x32   :  { %284 = vmatpush3.msra.mxu0 %v56_v11 }
  0x33   :  { %285 = vmatprep.subr.mxu0 %v55_v12 }
  0x34   :  { %286 = vmatpush3.msra.mxu0 %v55_v12 }
  0x35   :  { %287 = vmatprep.subr.mxu0 %v54_v13 }
  0x36   :  { %288 = vmatpush3.msra.mxu0 %v54_v13 }
  0x37   :  { %289 = vmatprep.subr.mxu0 %v53_v14 }
  0x38   :  { %290 = vmatpush3.msra.mxu0 %v53_v14 }
  0x39   :  { %291 = vmatprep.subr.mxu0 %v52_v15 }
  0x3a   :  { %292 = vmatpush3.msra.mxu0 %v52_v15 }
  0x3b   :  { %293 = vmatprep.subr.mxu0 %v51_v16 }
  0x3c   :  { %294 = vmatpush3.msra.mxu0 %v51_v16 }
  0x3d   :  { %296 = vmatmul.mubr.f32.vlgmr.msra.gmra.mxu0 %v50_v17 }
  0xfd   :  { %v297_v18 = vpop.f32.mrf.mxu0 }
  0xfe   :  { %v146_v21 = vadd.f32 %v297_v18, %v243_v19 }
  0xff   :  { %v140_v20 = vpop.f32.mrf.mxu0 }
 0x100   :  { %v141_v22 = vadd.f32 %v243_v19, %v140_v20 }
 0x102   :  { %303 = vtanh.f32 %v141_v22 }
 0x103   :  { %305 = vtanh.f32 %v146_v21 }
 0x10f   :  { %v304_v23 = vpop.eup %303 }
 0x110   :  { %v158_v25 = vmul.f32 %v304_v23, %v244_v24  ;;  %v306_v26 = vpop.eup %305 }
 0x111   :  { %v159_v27 = vmul.f32 %v306_v26, %v244_v24 }
 0x112   :  { %160 = vadd.xlane.f32.xlu0 %v158_v25 }
 0x116   :  { %162 = vadd.xlane.f32.xlu0 %v159_v27 }
 0x19b   :  { %v161_v31 = vpop.xlane.xlu0 %160 }
 0x19c   :  { %v173_v35 = vrot.slane %v161_v31, %v172_v32 }
 0x19f   :  { %v163_v34 = vpop.xlane.xlu0 %162 }
 0x1a0   :  { %v177_v36 = vrot.slane %v163_v34, %v172_v32 }
 0x1a2   :  { %v179_v37 = vsel %vm178_vm0, %v177_v36, %v173_v35 }
 0x1a3   :  { %v181_v38 = vsel %vm165_vm1, -1e+09, %v179_v37 }
 0x1a4   :  { %v183_v39 = vsel %vm182_vm2, %v181_v38, -inf }
 0x1a5   :  { %184 = vmax.xlane.f32.xlu1 %v183_v39 }
 0x22e   :  { %v185_v40 = vpop.xlane.xlu1 %184 }
 0x22f   :  { %v186_v41 = vsub.f32 %v181_v38, %v185_v40 }
 0x231   :  { %v187_v42 = vmul.f32 1.442695, %v186_v41 }
 0x233   :  { %307 = vpow2.f32 %v187_v42 }
 0x240   :  { %v308_v43 = vpop.eup %307 }
 0x241   :  { %v189_v44 = vsel %vm182_vm2, %v308_v43, 0.0 }
 0x242   :  { %190 = vadd.xlane.f32.xlu1 %v189_v44 }
 0x2cb   :  { %v191_v45 = vpop.xlane.xlu1 %190 }
 0x2cc   :  { %309 = vrcp.f32 %v191_v45 }
 0x2d9   :  { %v310_v48 = vpop.eup %309 }
 0x2da   :  { %v193_v49 = vmul.f32 %v310_v48, %v308_v43 }
 0x2dc   :  { %v204_v50 = vrot.slane %v193_v49, %v203_v46  ;;  %v197_v51 = vrot.slane %v193_v49, %v196_v47 }
 0x2de   :  { %206 = vbcast.lane.b32.xlu1 %v204_v50, 256  ;;  %199 = vbcast.lane.b32.xlu0 %v197_v51, 256 }
 0x350   :  { %v207_v52 = vpop.permute.xlu1 %206  ;;  %v200_v53 = vpop.permute.xlu0 %199 }
 0x351   :  { %v209_v54 = vmul.f32 %v207_v52, %v50_v17  ;;  %v208_v55 = vmul.f32 %v200_v53, %v418_v4 }
 0x353   :  { %v216_v56 = vrot.slane %v209_v54, 4  ;;  %v210_v57 = vrot.slane %v208_v55, 4 }
 0x355   :  { %v217_v58 = vadd.f32 %v216_v56, %v209_v54  ;;  %v211_v59 = vadd.f32 %v210_v57, %v208_v55 }
 0x357   :  { %v218_v60 = vrot.slane %v217_v58, 2  ;;  %v212_v61 = vrot.slane %v211_v59, 2 }
 0x359   :  { %v219_v62 = vadd.f32 %v218_v60, %v217_v58  ;;  %v213_v63 = vadd.f32 %v212_v61, %v211_v59 }
 0x35b   :  { %v220_v0 = vrot.slane %v219_v62, 1  ;;  %v214_v1 = vrot.slane %v213_v63, 1 }
 0x35d   :  { %v221_v2 = vadd.f32 %v220_v0, %v219_v62  ;;  %v215_v3 = vadd.f32 %v214_v1, %v213_v63 }
 0x35f   :  { %v224_v5 = vsel %vm178_vm0, %v221_v2, %v215_v3 }
 0x360   :  { %226 = vst [vmem:[#allocation7] sm:$0x3] %v224_v5 }
 0x361   :  { %362 = shalt.err (!%p359_p0)
}
 0x362   :  { %236 = dma.vmem_to_hbm [thread:$0]  %s234_s4, 32, %s441_s5, [#allocation4]  }
 0x363   :  { %375 = dma.done.wait [#allocation4], 32  }
 0x364   :  { %376 = vsyncadd [#allocation4], 4294967264 }
 0x365   :  { %240 = vsyncpa [#allocation3], 1 }
 0x366   :  { %241 = vsyncpa [#allocation6], 1 }
 0x367   :  { %242 = vsyncpa [#allocation4], 1 }

</bundles_post_ra>
